<compile_context>
chip_gen: v7x
topology: tpu7x:2x2x1
jax: 0.10.0
libtpu: 0.0.40
codegen_flags: <defaults>
</compile_context>

<pallas_src>
import jax
import jax.numpy as jnp
from jax.experimental import pallas as pl
from jax.experimental.pallas import tpu as pltpu

# The PyTorch module reads a global `cfg`; synthesize it deterministically.
MODEL_NAME = "PredRNN-V2"
DECOUPLE_LOSS_WEIGHT = 0.1

_INNER_ROWS = 64           # rows per in-kernel sub-step (bounds f32 temporaries)


# ---------------------------------------------------------------------------
# Per-generation parameters
# ---------------------------------------------------------------------------
def _hw_params():
    """Block-size / VMEM-limit / core-split defaults per TPU generation."""
    kind = ""
    try:
        kind = jax.devices()[0].device_kind.lower()
    except Exception:
        pass
    if "v7" in kind or "7x" in kind:
        # v7x: 64 MiB VMEM, 3.2 TB/s HBM, 2 TensorCores per chip.
        # 2 inputs x 2 buffers x 8 MiB = 32 MiB << 44 MiB limit < 64 MiB phys.
        return {"block_bytes": 8 << 20, "vmem_limit": 44 << 20, "num_cores": 2}
    if "v6" in kind:
        # v6e: 128 MiB VMEM, 1 TensorCore -> bigger blocks, no core split.
        return {"block_bytes": 12 << 20, "vmem_limit": 56 << 20, "num_cores": 1}
    if ("v5" in kind and "lite" in kind) or "v5e" in kind:
        # v5e: scoped-VMEM default is 16 MiB -> must raise it explicitly.
        return {"block_bytes": 6 << 20, "vmem_limit": 32 << 20, "num_cores": 1}
    # Unknown part (v4 / v5p / other): conservative defaults.
    return {"block_bytes": 4 << 20, "vmem_limit": 32 << 20, "num_cores": 1}


def _tile_geometry(rows, width, itemsize, block_bytes):
    """Pick (tile_rows, inner_rows) with tile_rows % inner_rows == 0 and
    inner_rows a multiple of 8 (or == rows for tiny inputs)."""
    if rows <= 8:
        return rows, rows                      # single tiny full-extent block
    rows_up8 = -(-rows // 8) * 8
    row_bytes = max(1, width * itemsize)
    tr = max(8, (block_bytes // row_bytes) // 8 * 8)
    if tr >= rows_up8:                         # whole problem in one block
        tile_rows = rows_up8
        inner = _INNER_ROWS if tile_rows % _INNER_ROWS == 0 else 8
        return tile_rows, inner
    inner = _INNER_ROWS if tr >= _INNER_ROWS else 8
    tile_rows = max(inner, (tr // inner) * inner)
    return tile_rows, inner


# ---------------------------------------------------------------------------
# Kernel
# ---------------------------------------------------------------------------
def _make_kernel(*, tile_rows, inner_rows, width, rows_valid,
                 steps_per_core, needs_mask, first_masked_tile):
    n_inner = tile_rows // inner_rows
    grouped = inner_rows % 8 == 0              # 8-row sublane-group accumulate

    def kernel(t_ref, p_ref, sq_out, ab_out, sq_acc, ab_acc):
        c = pl.program_id(0)                   # core split (leading, parallel)
        i = pl.program_id(1)                   # reduction axis (arbitrary)
        g_tile = c * steps_per_core + i        # global tile index (unclamped)

        @pl.when(i == 0)
        def _init():
            sq_acc[...] = jnp.zeros_like(sq_acc)
            ab_acc[...] = jnp.zeros_like(ab_acc)

        def accumulate(masked):
            # Sub-loop over small slabs: only one (inner_rows, width) f32
            # temporary is live at a time, independent of the block size.
            def body(j, carry):
                r0 = pl.multiple_of(j * inner_rows, inner_rows)
                t = t_ref[pl.ds(r0, inner_rows), :].astype(jnp.float32)
                p = p_ref[pl.ds(r0, inner_rows), :].astype(jnp.float32)
                d = t - p
                sq = d * d
                ab = jnp.abs(d)
                if masked:
                    # Mask rows past the true row count (compile-time const);
                    # jnp.where is a select, safe even if the OOB VMEM bytes
                    # are NaN/Inf garbage.
                    row0 = g_tile * tile_rows + j * inner_rows
                    ridx = row0 + jax.lax.broadcasted_iota(jnp.int32, d.shape, 0)
                    keep = ridx < rows_valid
                    sq = jnp.where(keep, sq, 0.0)
                    ab = jnp.where(keep, ab, 0.0)
                if grouped:
                    # Leading-axis sums: pure vreg-wise VPU adds (no XLU).
                    sq_acc[...] += jnp.sum(
                        sq.reshape(inner_rows // 8, 8, width), axis=0)
                    ab_acc[...] += jnp.sum(
                        ab.reshape(inner_rows // 8, 8, width), axis=0)
                else:
                    sq_acc[...] += sq
                    ab_acc[...] += ab
                return carry

            jax.lax.fori_loop(0, n_inner, body, 0)

        if needs_mask:
            in_tail = g_tile >= first_masked_tile

            @pl.when(jnp.logical_not(in_tail))
            def _clean():
                accumulate(False)

            @pl.when(in_tail)
            def _tail():
                accumulate(True)
        else:
            accumulate(False)

        @pl.when(i == pl.num_programs(1) - 1)
        def _flush():
            # Single cross-lane/sublane reduction per core, only on last step.
            sq_out[...] = jnp.broadcast_to(jnp.sum(sq_acc[...]), sq_out.shape)
            ab_out[...] = jnp.broadcast_to(jnp.sum(ab_acc[...]), ab_out.shape)

    acc_rows = 8 if grouped else inner_rows
    return kernel, acc_rows


# ---------------------------------------------------------------------------
# Wrappers
# ---------------------------------------------------------------------------
def _diff_sums_2d(t2d, p2d, *, block_bytes, vmem_limit, num_cores):
    """sum((t-p)^2) and sum(|t-p|) over a 2D view, in one streaming kernel."""
    rows, width = t2d.shape
    itemsize = jnp.dtype(t2d.dtype).itemsize
    tile_rows, inner_rows = _tile_geometry(rows, width, itemsize, block_bytes)

    total_tiles = -(-rows // tile_rows)
    num_cores = num_cores if total_tiles >= num_cores else 1
    steps_per_core = -(-total_tiles // num_cores)

    ragged_rows = rows % tile_rows != 0
    extra_tiles = num_cores * steps_per_core != total_tiles
    needs_mask = ragged_rows or extra_tiles
    first_masked_tile = total_tiles - 1 if ragged_rows else total_tiles
    last_tile = total_tiles - 1

    if extra_tiles:
        # Clamp so no block index points past the array; the (duplicate)
        # clamped reads are fully masked out in-kernel, so no double counting.
        in_map = lambda c, i: (jnp.minimum(c * steps_per_core + i, last_tile), 0)
    else:
        in_map = lambda c, i: (c * steps_per_core + i, 0)
    out_map = lambda c, i: (c, 0, 0)

    kernel, acc_rows = _make_kernel(
        tile_rows=tile_rows, inner_rows=inner_rows, width=width,
        rows_valid=rows, steps_per_core=steps_per_core,
        needs_mask=needs_mask, first_masked_tile=first_masked_tile)

    sq, ab = pl.pallas_call(
        kernel,
        out_shape=(jax.ShapeDtypeStruct((num_cores, 8, 128), jnp.float32),
                   jax.ShapeDtypeStruct((num_cores, 8, 128), jnp.float32)),
        grid_spec=pltpu.PrefetchScalarGridSpec(
            num_scalar_prefetch=0,
            grid=(num_cores, steps_per_core),
            in_specs=[pl.BlockSpec((tile_rows, width), in_map),
                      pl.BlockSpec((tile_rows, width), in_map)],
            out_specs=[pl.BlockSpec((1, 8, 128), out_map),
                       pl.BlockSpec((1, 8, 128), out_map)],
            scratch_shapes=[pltpu.VMEM((acc_rows, width), jnp.float32),
                            pltpu.VMEM((acc_rows, width), jnp.float32)]),
        compiler_params=pltpu.CompilerParams(
            dimension_semantics=("parallel", "arbitrary"),
            vmem_limit_bytes=vmem_limit),
    )(t2d, p2d)
    # Combine the per-core partial sums (<= 2 elements).
    return jnp.sum(sq[:, 0, 0]), jnp.sum(ab[:, 0, 0])


def loss_fn(truth, pred, decouple_loss, *, block_bytes=None, num_cores=None):
    """Pallas version of Loss.forward(truth, pred, decouple_loss)."""
    B, T = truth.shape[0], truth.shape[1]
    feat = 1
    for s in truth.shape[2:]:
        feat *= s
    n = B * T
    total = n * feat

    hw = _hw_params()
    if block_bytes is not None:
        hw["block_bytes"] = block_bytes
    if num_cores is not None:
        hw["num_cores"] = num_cores

    # Lane-dense 2D view: fixed width (multiple of 128) independent of C*H*W.
    width = None
    for cand in (1024, 512, 256, 128):
        if total % cand == 0 and total // cand >= 8:
            width = cand
            break
    if width is None:
        for cand in (1024, 512, 256, 128):
            if total % cand == 0:
                width = cand
                break
    if width is None:
        width = feat          # rare fallback: full-extent (unaligned) last dim
    rows = total // width

    t2d = truth.reshape(rows, width)   # contiguous row-major reshape: no copy
    p2d = pred.reshape(rows, width)
    sq_sum, ab_sum = _diff_sums_2d(t2d, p2d, **hw)

    # mean over (B, T) of per-sample sums == total sum / (B*T)
    loss = (sq_sum + ab_sum) / jnp.float32(n)

    if "PredRNN-V2" in MODEL_NAME:
        d0, _, d2, _ = decouple_loss.shape
        # Tiny tensor: plain XLA reduction; a dedicated pallas_call costs more
        # in launch/pipeline prologue than the reduction itself.
        dl = jnp.sum(decouple_loss.astype(jnp.float32)) / jnp.float32(d0 * d2)
        loss = loss + jnp.float32(DECOUPLE_LOSS_WEIGHT) * dl

    return loss


# ---------------------------------------------------------------------------
# Demo / self-check
# ---------------------------------------------------------------------------
def _reference(truth, pred, decouple):
    differ = truth.astype(jnp.float32) - pred.astype(jnp.float32)
    mse_ref = jnp.mean(jnp.sum(differ ** 2, axis=(2, 3, 4)))
    mae_ref = jnp.mean(jnp.sum(jnp.abs(differ), axis=(2, 3, 4)))
    dl_ref = jnp.mean(jnp.sum(decouple.astype(jnp.float32), axis=(1, 3)))
    return mse_ref + mae_ref + DECOUPLE_LOSS_WEIGHT * dl_ref


if __name__ == "__main__":
    C, H, W = 4, 16, 16                        # truth / pred: (B, T, C, H, W)
    L, D = 4, 32                               # decouple_loss: (B, L, T, D)

    def check(key, B, T, dtype=jnp.float32, **kw):
        k1, k2, k3 = jax.random.split(key, 3)
        truth = jax.random.normal(k1, (B, T, C, H, W), jnp.float32).astype(dtype)
        pred = jax.random.normal(k2, (B, T, C, H, W), jnp.float32).astype(dtype)
        dec = jax.random.normal(k3, (B, L, T, D), jnp.float32)
        out = jax.block_until_ready(loss_fn(truth, pred, dec, **kw))
        ref = _reference(truth, pred, dec)
        assert jnp.allclose(out, ref, rtol=1e-4, atol=1e-3), (kw, out, ref)
        return out

    keys = jax.random.split(jax.random.PRNGKey(0), 5)

    # 1) default tiling (single block, no masking)
    check(keys[0], B=2, T=8)
    # 2) forced multi-tile streaming / accumulation path
    check(keys[1], B=4, T=8, block_bytes=32 * 1024)
    # 3) ragged row count -> in-kernel tail masking (no host-side padding)
    check(keys[2], B=2, T=5)
    # 4) forced 2-core split with odd tile count (clamped + fully-masked tile)
    check(keys[3], B=3, T=8, block_bytes=32 * 1024, num_cores=2)
    # 5) bf16 inputs streamed directly (half the HBM bytes), f32 accumulation
    check(keys[4], B=2, T=8, dtype=jnp.bfloat16)

    print("KERNEL_OK")
</pallas_src>

<mosaic_0001>
module attributes {stable_mosaic.version = 11 : i64} {
  func.func @kernel(%arg0: i32, %arg1: i32, %arg2: memref<16x1024xf32, #tpu.memory_space<vmem>>, %arg3: memref<16x1024xf32, #tpu.memory_space<vmem>>, %arg4: memref<1x8x128xf32, #tpu.memory_space<vmem>>, %arg5: memref<1x8x128xf32, #tpu.memory_space<vmem>>, %arg6: memref<8x1024xf32, #tpu.memory_space<vmem>>, %arg7: memref<8x1024xf32, #tpu.memory_space<vmem>>) attributes {dimension_semantics = [#tpu.dimension_semantics<parallel>, #tpu.dimension_semantics<arbitrary>], iteration_bounds = array<i64: 1, 1>, scalar_prefetch = 0 : i64, scratch_operands = 2 : i64, tpu.core_type = #tpu.core_type<tc>, window_params = [{transform_indices = @transform_0, window_bounds = array<i64: 16, 1024>}, {transform_indices = @transform_1, window_bounds = array<i64: 16, 1024>}, {transform_indices = @transform_2, window_bounds = array<i64: 1, 8, 128>}, {transform_indices = @transform_3, window_bounds = array<i64: 1, 8, 128>}]} {
    %c0_i32 = arith.constant 0 : i32
    %0 = arith.cmpi eq, %arg1, %c0_i32 : i32
    %1 = arith.extui %0 : i1 to i32
    %c0_i32_0 = arith.constant 0 : i32
    %2 = arith.cmpi ne, %1, %c0_i32_0 : i32
    scf.if %2 {
      %cst = arith.constant 0.000000e+00 : f32
      %7 = vector.broadcast %cst : f32 to vector<8x1024xf32>
      %c0 = arith.constant 0 : index
      %c0_5 = arith.constant 0 : index
      %8 = vector.load %arg6[%c0, %c0_5] : memref<8x1024xf32, #tpu.memory_space<vmem>>, vector<8x1024xf32>
      tpu.vector_store %arg6[%c0, %c0_5], %7 {strides = array<i32>} : memref<8x1024xf32, #tpu.memory_space<vmem>>, vector<8x1024xf32>,
      %cst_6 = arith.constant 0.000000e+00 : f32
      %9 = vector.broadcast %cst_6 : f32 to vector<8x1024xf32>
      %c0_7 = arith.constant 0 : index
      %c0_8 = arith.constant 0 : index
      %10 = vector.load %arg7[%c0_7, %c0_8] : memref<8x1024xf32, #tpu.memory_space<vmem>>, vector<8x1024xf32>
      tpu.vector_store %arg7[%c0_7, %c0_8], %9 {strides = array<i32>} : memref<8x1024xf32, #tpu.memory_space<vmem>>, vector<8x1024xf32>,
    } else {
    }
    %c0_i32_1 = arith.constant 0 : i32
    %c2_i32 = arith.constant 2 : i32
    %3 = arith.addi %c0_i32_1, %c2_i32 : i32
    %c1_i32 = arith.constant 1 : i32
    scf.for %arg8 = %c0_i32_1 to %3 step %c1_i32  : i32 {
      %c8_i32 = arith.constant 8 : i32
      %7 = arith.muli %arg8, %c8_i32 : i32
      %8 = tpu.assume_multiple %7, 8 : i32
      %9 = arith.index_cast %8 : i32 to index
      %c0 = arith.constant 0 : index
      %10 = vector.load %arg2[%9, %c0] : memref<16x1024xf32, #tpu.memory_space<vmem>>, vector<8x1024xf32>
      %11 = arith.index_cast %8 : i32 to index
      %c0_5 = arith.constant 0 : index
      %12 = vector.load %arg3[%11, %c0_5] : memref<16x1024xf32, #tpu.memory_space<vmem>>, vector<8x1024xf32>
      %13 = arith.subf %10, %12 : vector<8x1024xf32>
      %14 = arith.mulf %13, %13 : vector<8x1024xf32>
      %15 = math.absf %13 : vector<8x1024xf32>
      %c0_6 = arith.constant 0 : index
      %c0_7 = arith.constant 0 : index
      %16 = vector.load %arg6[%c0_6, %c0_7] : memref<8x1024xf32, #tpu.memory_space<vmem>>, vector<8x1024xf32>
      %17 = vector.shape_cast %14 : vector<8x1024xf32> to vector<1x8x1024xf32>
      %cst = arith.constant dense<0.000000e+00> : vector<8x1024xf32>
      %18 = vector.multi_reduction <add>, %17, %cst [0] : vector<1x8x1024xf32> to vector<8x1024xf32>
      %19 = arith.addf %16, %18 : vector<8x1024xf32>
      %c0_8 = arith.constant 0 : index
      %c0_9 = arith.constant 0 : index
      %20 = vector.load %arg6[%c0_8, %c0_9] : memref<8x1024xf32, #tpu.memory_space<vmem>>, vector<8x1024xf32>
      tpu.vector_store %arg6[%c0_8, %c0_9], %19 {strides = array<i32>} : memref<8x1024xf32, #tpu.memory_space<vmem>>, vector<8x1024xf32>,
      %c0_10 = arith.constant 0 : index
      %c0_11 = arith.constant 0 : index
      %21 = vector.load %arg7[%c0_10, %c0_11] : memref<8x1024xf32, #tpu.memory_space<vmem>>, vector<8x1024xf32>
      %22 = vector.shape_cast %15 : vector<8x1024xf32> to vector<1x8x1024xf32>
      %cst_12 = arith.constant dense<0.000000e+00> : vector<8x1024xf32>
      %23 = vector.multi_reduction <add>, %22, %cst_12 [0] : vector<1x8x1024xf32> to vector<8x1024xf32>
      %24 = arith.addf %21, %23 : vector<8x1024xf32>
      %c0_13 = arith.constant 0 : index
      %c0_14 = arith.constant 0 : index
      %25 = vector.load %arg7[%c0_13, %c0_14] : memref<8x1024xf32, #tpu.memory_space<vmem>>, vector<8x1024xf32>
      tpu.vector_store %arg7[%c0_13, %c0_14], %24 {strides = array<i32>} : memref<8x1024xf32, #tpu.memory_space<vmem>>, vector<8x1024xf32>,
    }
    %c2_i32_2 = arith.constant 2 : i32
    %c0_i32_3 = arith.constant 0 : i32
    %4 = arith.cmpi eq, %arg1, %c0_i32_3 : i32
    %5 = arith.extui %4 : i1 to i32
    %c0_i32_4 = arith.constant 0 : i32
    %6 = arith.cmpi ne, %5, %c0_i32_4 : i32
    scf.if %6 {
      %c0 = arith.constant 0 : index
      %c0_5 = arith.constant 0 : index
      %7 = vector.load %arg6[%c0, %c0_5] : memref<8x1024xf32, #tpu.memory_space<vmem>>, vector<8x1024xf32>
      %8 = vector.shape_cast %7 : vector<8x1024xf32> to vector<1x8x1024xf32>
      %cst = arith.constant dense<0.000000e+00> : vector<1xf32>
      %9 = vector.multi_reduction <add>, %8, %cst [1, 2] : vector<1x8x1024xf32> to vector<1xf32>
      %10 = vector.shape_cast %9 : vector<1xf32> to vector<1x1x1xf32>
      %11 = vector.extract %10[0, 0, 0] : f32 from vector<1x1x1xf32>
      %12 = vector.broadcast %11 : f32 to vector<1x8x128xf32>
      %c0_6 = arith.constant 0 : index
      %c0_7 = arith.constant 0 : index
      %c0_8 = arith.constant 0 : index
      %13 = vector.load %arg4[%c0_6, %c0_7, %c0_8] : memref<1x8x128xf32, #tpu.memory_space<vmem>>, vector<1x8x128xf32>
      tpu.vector_store %arg4[%c0_6, %c0_7, %c0_8], %12 {strides = array<i32>} : memref<1x8x128xf32, #tpu.memory_space<vmem>>, vector<1x8x128xf32>,
      %c0_9 = arith.constant 0 : index
      %c0_10 = arith.constant 0 : index
      %14 = vector.load %arg7[%c0_9, %c0_10] : memref<8x1024xf32, #tpu.memory_space<vmem>>, vector<8x1024xf32>
      %15 = vector.shape_cast %14 : vector<8x1024xf32> to vector<1x8x1024xf32>
      %cst_11 = arith.constant dense<0.000000e+00> : vector<1xf32>
      %16 = vector.multi_reduction <add>, %15, %cst_11 [1, 2] : vector<1x8x1024xf32> to vector<1xf32>
      %17 = vector.shape_cast %16 : vector<1xf32> to vector<1x1x1xf32>
      %18 = vector.extract %17[0, 0, 0] : f32 from vector<1x1x1xf32>
      %19 = vector.broadcast %18 : f32 to vector<1x8x128xf32>
      %c0_12 = arith.constant 0 : index
      %c0_13 = arith.constant 0 : index
      %c0_14 = arith.constant 0 : index
      %20 = vector.load %arg5[%c0_12, %c0_13, %c0_14] : memref<1x8x128xf32, #tpu.memory_space<vmem>>, vector<1x8x128xf32>
      tpu.vector_store %arg5[%c0_12, %c0_13, %c0_14], %19 {strides = array<i32>} : memref<1x8x128xf32, #tpu.memory_space<vmem>>, vector<1x8x128xf32>,
    } else {
    }
    return
  }
  func.func @transform_0(%arg0: i32, %arg1: i32) -> (i32, i32) {
    %c1_i32 = arith.constant 1 : i32
    %0 = arith.muli %arg0, %c1_i32 : i32
    %1 = arith.addi %0, %arg1 : i32
    %c0_i32 = arith.constant 0 : i32
    %c0_i32_0 = arith.constant 0 : i32
    return %1, %c0_i32 : i32, i32
  }
  func.func @transform_1(%arg0: i32, %arg1: i32) -> (i32, i32) {
    %c1_i32 = arith.constant 1 : i32
    %0 = arith.muli %arg0, %c1_i32 : i32
    %1 = arith.addi %0, %arg1 : i32
    %c0_i32 = arith.constant 0 : i32
    %c0_i32_0 = arith.constant 0 : i32
    return %1, %c0_i32 : i32, i32
  }
  func.func @transform_2(%arg0: i32, %arg1: i32) -> (i32, i32, i32) {
    %c0_i32 = arith.constant 0 : i32
    %c0_i32_0 = arith.constant 0 : i32
    %c0_i32_1 = arith.constant 0 : i32
    return %arg0, %c0_i32, %c0_i32_0 : i32, i32, i32
  }
  func.func @transform_3(%arg0: i32, %arg1: i32) -> (i32, i32, i32) {
    %c0_i32 = arith.constant 0 : i32
    %c0_i32_0 = arith.constant 0 : i32
    %c0_i32_1 = arith.constant 0 : i32
    return %arg0, %c0_i32, %c0_i32_0 : i32, i32, i32
  }
}

</mosaic_0001>

<bundles_post_ra>
// kernel: tpu_custom_call.1
= control target key start
LH: loop header
LB: loop body
LE: loop exit
PB: predicated region body
PF: predicated region fallthrough
CT: control target
= control target key end

     0   :  { %9 = vsyncpa [#allocation5], 0  ;;  %s522_s0 = inlined_call_operand.hbm [shape: f32[16,1024], index: 0, kind: input, shape index: {}]   ;;  %s523_s1 = inlined_call_operand.hbm [shape: f32[16,1024], index: 1, kind: input, shape index: {}]   ;;  %s524_s2 = inlined_call_operand.hbm [shape: f32[1,8,128], index: 2, kind: output, shape index: {0}]   ;;  %s525_s3 = inlined_call_operand.hbm [shape: f32[1,8,128], index: 3, kind: output, shape index: {1}]  }
   0x1   :  { %10 = vsyncpa [#allocation8], 0 }
   0x2   :  { %11 = vsyncpa [#allocation6], 0 }
   0x3   :  { %12 = vsyncpa [#allocation11], 0  ;;  %s418_s12 = smov [#allocation4]   ;;  %s314_s16 = scalar_lea.hbm %s522_s0, 2048 }
   0x4   :  { %s23_s13 = sshll.u32 %s418_s12, 4  ;;  %p315_p0 = scmp.ne.s32.totalorder %s522_s0, %s314_s16  ;;  %s24_s13 = int_to_ptr.vmem [resolvable:$true] %s23_s13 }
   0x5   :  { %p318_p1 = scmp.lt.u32.totalorder %s314_s16, %s522_s0 }
   0x7   :  { %p320_p2 = pnand %p318_p1, %p315_p0 }
   0x9   :  { %323 = shalt.err (!%p320_p2)
}
   0xa   :  { %s324_s21 = scalar_lea.vmem %s24_s13, 2048  ;;  %p329_p4 = scmp.lt.s32.totalorder %s24_s13, %s24_s13 }
   0xb   :  { %p325_p3 = scmp.ne.s32.totalorder %s24_s13, %s324_s21  ;;  %p330_p5 = scmp.lt.s32.totalorder %s324_s21, %s324_s21 }
   0xd   :  { %p331_p6 = por %p330_p5, %p329_p4 }
   0xf   :  { %p332_p7 = pnand %p331_p6, %p325_p3 }
  0x11   :  { %335 = shalt.err (!%p332_p7)
}
  0x12   :  { %s419_s22 = smov 1024   ;;  %s420_s23 = smov 64  }
  0x13   :  { %29 = dma.hbm_to_vmem [thread:$0]  %s522_s0, 2048, %s24_s13, [#allocation5], %s419_s22, %s419_s22, %s420_s23  }
  0x14   :  { %s421_s26 = smov [#allocation7]   ;;  %s336_s30 = scalar_lea.hbm %s523_s1, 2048 }
  0x15   :  { %s40_s27 = sshll.u32 %s421_s26, 4  ;;  %p337_p8 = scmp.ne.s32.totalorder %s523_s1, %s336_s30  ;;  %s41_s27 = int_to_ptr.vmem [resolvable:$true] %s40_s27 }
  0x16   :  { %p340_p9 = scmp.lt.u32.totalorder %s336_s30, %s523_s1 }
  0x18   :  { %p342_p10 = pnand %p340_p9, %p337_p8 }
  0x1a   :  { %345 = shalt.err (!%p342_p10)
}
  0x1b   :  { %s346_s8 = scalar_lea.vmem %s41_s27, 2048  ;;  %p351_p12 = scmp.lt.s32.totalorder %s41_s27, %s41_s27 }
  0x1c   :  { %p347_p11 = scmp.ne.s32.totalorder %s41_s27, %s346_s8  ;;  %p352_p13 = scmp.lt.s32.totalorder %s346_s8, %s346_s8 }
  0x1e   :  { %p353_p0 = por %p352_p13, %p351_p12 }
  0x20   :  { %p354_p1 = pnand %p353_p0, %p347_p11 }
  0x22   :  { %357 = shalt.err (!%p354_p1)
}
  0x23   :  { %46 = dma.hbm_to_vmem [thread:$0]  %s523_s1, 2048, %s41_s27, [#allocation8], %s419_s22, %s419_s22, %s420_s23  }
  0x24   :  { %406 = dma.done.wait [#allocation5], 2048  }
  0x25   :  { %407 = vsyncadd [#allocation5], 4294965248 }
  0x26   :  { %408 = dma.done.wait [#allocation8], 2048  }
  0x27   :  { %409 = vsyncadd [#allocation8], 4294965248  ;;  %v422_v0 = vmov 0.0   ;;  %s469_s1 = smov 0  }
  0x28   :  { %61 = vst [vmem:[#allocation2] sm:$0xff] %v422_v0  ;;  %62 = vst [vmem:[#allocation2 + $0x8] sm:$0xff] %v422_v0 }
  0x29   :  { %63 = vst [vmem:[#allocation2 + $0x10] sm:$0xff] %v422_v0  ;;  %64 = vst [vmem:[#allocation2 + $0x18] sm:$0xff] %v422_v0 }
  0x2a   :  { %65 = vst [vmem:[#allocation2 + $0x20] sm:$0xff] %v422_v0  ;;  %66 = vst [vmem:[#allocation2 + $0x28] sm:$0xff] %v422_v0 }
  0x2b   :  { %67 = vst [vmem:[#allocation2 + $0x30] sm:$0xff] %v422_v0  ;;  %68 = vst [vmem:[#allocation2 + $0x38] sm:$0xff] %v422_v0 }
  0x2c   :  { %69 = vst [vmem:[#allocation3] sm:$0xff] %v422_v0  ;;  %70 = vst [vmem:[#allocation3 + $0x8] sm:$0xff] %v422_v0 }
  0x2d   :  { %71 = vst [vmem:[#allocation3 + $0x10] sm:$0xff] %v422_v0  ;;  %72 = vst [vmem:[#allocation3 + $0x18] sm:$0xff] %v422_v0 }
  0x2e   :  { %73 = vst [vmem:[#allocation3 + $0x20] sm:$0xff] %v422_v0  ;;  %74 = vst [vmem:[#allocation3 + $0x28] sm:$0xff] %v422_v0 }
  0x2f   :  { %75 = vst [vmem:[#allocation3 + $0x30] sm:$0xff] %v422_v0  ;;  %76 = vst [vmem:[#allocation3 + $0x38] sm:$0xff] %v422_v0 }
  0x30 LB: > { %s289_s10 = sshll.u32 %s416_s1, 3  ;;  %v131_v3 = vld [vmem:[#allocation2] sm:$0xff]  ;;  %v132_v8 = vld [vmem:[#allocation2 + $0x8] sm:$0xff]  ;;  %v133_v11 = vld [vmem:[#allocation2 + $0x10] sm:$0xff]  ;;  %s82_s1 = sadd.s32 1, %s416_s1   ;;  %s416_s1 = sphi %s469_s1, %s82_s1  }
  0x31   : > { %s84_s11 = sshra.s32 %s289_s10, 3  ;;  %v134_v16 = vld [vmem:[#allocation2 + $0x18] sm:$0xff]  ;;  %v135_v33 = vld [vmem:[#allocation2 + $0x20] sm:$0xff]  ;;  %v136_v34 = vld [vmem:[#allocation2 + $0x28] sm:$0xff]  ;;  %p79_p2 = scmp.ge.s32.totalorder %s82_s1, 2  }
  0x32   : > { %s293_s12 = sshll.u32 %s84_s11, 6  ;;  %v137_v42 = vld [vmem:[#allocation2 + $0x30] sm:$0xff]  ;;  %v138_v52 = vld [vmem:[#allocation2 + $0x38] sm:$0xff]  ;;  %s423_s15 = smov (%p79_p2), [#allocation9]  }
  0x33   : > { %s475_s13 = scalar_lea.vmem [#allocation4], %s293_s12  ;;  %s478_s14 = scalar_lea.vmem [#allocation7], %s293_s12  ;;  %v163_v5 = vld [vmem:[#allocation3] sm:$0xff]  ;;  %v164_v43 = vld [vmem:[#allocation3 + $0x8] sm:$0xff] }
  0x34   : > { %v89_v1 = vld [vmem:[%s475_s13] sm:$0xff]  ;;  %v90_v4 = vld [vmem:[%s475_s13 + $0x8] sm:$0xff]  ;;  %v91_v9 = vld [vmem:[%s475_s13 + $0x10] sm:$0xff]  ;;  %s256_s16 = sshll.u32 (%p79_p2), %s423_s15, 4  ;;  %s424_s18 = smov (%p79_p2), [#allocation10]   ;;  %s257_s16 = int_to_ptr.vmem [resolvable:$true] %s256_s16 }
  0x35   : > { %v99_v2 = vld [vmem:[%s478_s14] sm:$0xff]  ;;  %v100_v7 = vld [vmem:[%s478_s14 + $0x8] sm:$0xff]  ;;  %v101_v10 = vld [vmem:[%s478_s14 + $0x10] sm:$0xff]  ;;  %s266_s19 = sshll.u32 (%p79_p2), %s424_s18, 4  ;;  %s358_s20 = scalar_lea.vmem (%p79_p2), %s257_s16, 128  ;;  %s267_s19 = int_to_ptr.vmem [resolvable:$true] %s266_s19 }
  0x36   : > { %v107_v6 = vsub.f32 %v89_v1, %v99_v2  ;;  %v108_v12 = vsub.f32 %v90_v4, %v100_v7  ;;  %v109_v13 = vsub.f32 %v91_v9, %v101_v10  ;;  %v92_v14 = vld [vmem:[%s475_s13 + $0x18] sm:$0xff]  ;;  %v93_v17 = vld [vmem:[%s475_s13 + $0x20] sm:$0xff]  ;;  %v94_v21 = vld [vmem:[%s475_s13 + $0x28] sm:$0xff]  ;;  %p359_p3 = scmp.ne.s32.totalorder (%p79_p2), %s257_s16, %s358_s20  ;;  %p363_p4 = scmp.lt.s32.totalorder (%p79_p2), %s257_s16, %s257_s16 }
  0x37   : > { %v102_v15 = vld [vmem:[%s478_s14 + $0x18] sm:$0xff]  ;;  %v103_v20 = vld [vmem:[%s478_s14 + $0x20] sm:$0xff]  ;;  %v104_v22 = vld [vmem:[%s478_s14 + $0x28] sm:$0xff]  ;;  %p364_p5 = scmp.lt.s32.totalorder (%p79_p2), %s358_s20, %s358_s20 }
  0x38   : > { %v115_v18 = vmul.f32 %v107_v6, %v107_v6  ;;  %v110_v19 = vsub.f32 %v92_v14, %v102_v15  ;;  %v123_v23 = vand.u32 2147483647, %v107_v6  ;;  %v116_v24 = vmul.f32 %v108_v12, %v108_v12  ;;  %v95_v28 = vld [vmem:[%s475_s13 + $0x30] sm:$0xff]  ;;  %v96_v30 = vld [vmem:[%s475_s13 + $0x38] sm:$0xff]  ;;  %v167_v55 = vld [vmem:[#allocation3 + $0x20] sm:$0xff] }
  0x39   : > { %v117_v25 = vmul.f32 %v109_v13, %v109_v13  ;;  %v111_v26 = vsub.f32 %v93_v17, %v103_v20  ;;  %v112_v27 = vsub.f32 %v94_v21, %v104_v22  ;;  %v105_v29 = vld [vmem:[%s478_s14 + $0x30] sm:$0xff]  ;;  %v106_v36 = vld [vmem:[%s478_s14 + $0x38] sm:$0xff]  ;;  %v124_v47 = vand.u32 2147483647, %v108_v12  ;;  %v168_v60 = vld [vmem:[#allocation3 + $0x28] sm:$0xff]  ;;  %p365_p6 = por (%p79_p2), %p364_p5, %p363_p4 }
  0x3a   : > { %v147_v31 = vadd.f32 %v131_v3, %v115_v18  ;;  %v118_v32 = vmul.f32 %v110_v19, %v110_v19  ;;  %v113_v35 = vsub.f32 %v95_v28, %v105_v29  ;;  %v179_v37 = vadd.f32 %v163_v5, %v123_v23  ;;  %v165_v48 = vld [vmem:[#allocation3 + $0x10] sm:$0xff]  ;;  %v166_v49 = vld [vmem:[#allocation3 + $0x18] sm:$0xff] }
  0x3b   : > { %v148_v38 = vadd.f32 %v132_v8, %v116_v24  ;;  %v149_v39 = vadd.f32 %v133_v11, %v117_v25  ;;  %v119_v40 = vmul.f32 %v111_v26, %v111_v26  ;;  %v120_v41 = vmul.f32 %v112_v27, %v112_v27  ;;  %v169_v61 = vld [vmem:[#allocation3 + $0x30] sm:$0xff]  ;;  %v170_v2 = vld [vmem:[#allocation3 + $0x38] sm:$0xff]  ;;  %p366_p7 = pnand (%p79_p2), %p365_p6, %p359_p3 }
  0x3c   : > { %155 = vst [vmem:[#allocation2] sm:$0xff] %v147_v31  ;;  %v150_v44 = vadd.f32 %v134_v16, %v118_v32  ;;  %v121_v45 = vmul.f32 %v113_v35, %v113_v35  ;;  %v114_v46 = vsub.f32 %v96_v30, %v106_v36  ;;  %187 = vst [vmem:[#allocation3] sm:$0xff] %v179_v37  ;;  %v125_v53 = vand.u32 2147483647, %v109_v13 }
  0x3d   : > { %156 = vst [vmem:[#allocation2 + $0x8] sm:$0xff] %v148_v38  ;;  %157 = vst [vmem:[#allocation2 + $0x10] sm:$0xff] %v149_v39  ;;  %v151_v50 = vadd.f32 %v135_v33, %v119_v40  ;;  %v152_v51 = vadd.f32 %v136_v34, %v120_v41  ;;  %v126_v54 = vand.u32 2147483647, %v110_v19  ;;  %v180_v58 = vadd.f32 %v164_v43, %v124_v47 }
  0x3e   : > { %158 = vst [vmem:[#allocation2 + $0x18] sm:$0xff] %v150_v44  ;;  %v153_v56 = vadd.f32 %v137_v42, %v121_v45  ;;  %v122_v57 = vmul.f32 %v114_v46, %v114_v46  ;;  %v127_v59 = vand.u32 2147483647, %v111_v26  ;;  %v181_v62 = vadd.f32 %v165_v48, %v125_v53 }
  0x3f   : > { %159 = vst [vmem:[#allocation2 + $0x20] sm:$0xff] %v151_v50  ;;  %160 = vst [vmem:[#allocation2 + $0x28] sm:$0xff] %v152_v51  ;;  %v182_v63 = vadd.f32 %v166_v49, %v126_v54  ;;  %v128_v0 = vand.u32 2147483647, %v112_v27  ;;  %v129_v1 = vand.u32 2147483647, %v113_v35 }
  0x40   : > { %161 = vst [vmem:[#allocation2 + $0x30] sm:$0xff] %v153_v56  ;;  %v154_v3 = vadd.f32 %v138_v52, %v122_v57  ;;  %188 = vst [vmem:[#allocation3 + $0x8] sm:$0xff] %v180_v58  ;;  %v183_v4 = vadd.f32 %v167_v55, %v127_v59  ;;  %v130_v5 = vand.u32 2147483647, %v114_v46 }
  0x41   : > { %189 = vst [vmem:[#allocation3 + $0x10] sm:$0xff] %v181_v62  ;;  %190 = vst [vmem:[#allocation3 + $0x18] sm:$0xff] %v182_v63  ;;  %v184_v6 = vadd.f32 %v168_v60, %v128_v0  ;;  %v185_v7 = vadd.f32 %v169_v61, %v129_v1 }
  0x42   : > { %162 = vst [vmem:[#allocation2 + $0x38] sm:$0xff] %v154_v3  ;;  %191 = vst [vmem:[#allocation3 + $0x20] sm:$0xff] %v183_v4  ;;  %v186_v8 = vadd.f32 %v170_v2, %v130_v5 }
  0x43   : > { %192 = vst [vmem:[#allocation3 + $0x28] sm:$0xff] %v184_v6  ;;  %193 = vst [vmem:[#allocation3 + $0x30] sm:$0xff] %v185_v7  ;;  %81 = sbr.rel (!%p79_p2) target bundleno = 48 (0x30), region = 63  ;;  %v198_v9 = vld [vmem:[#allocation2] sm:$0xff] (%p79_p2) }
  0x44   : > { %194 = vst [vmem:[#allocation3 + $0x38] sm:$0xff] %v186_v8  ;;  %v199_v10 = vld [vmem:[#allocation2 + $0x8] sm:$0xff] (%p79_p2)  ;;  %v200_v11 = vld [vmem:[#allocation2 + $0x10] sm:$0xff] (%p79_p2)  ;;  %v224_v14 = vld [vmem:[#allocation3] sm:$0xff] (%p79_p2) }
  0x45   :  { %v206_v12 = vadd.f32 (%p79_p2), %v199_v10, %v198_v9  ;;  %v201_v13 = vld [vmem:[#allocation2 + $0x18] sm:$0xff] (%p79_p2) }
  0x46   :  { %v202_v18 = vld [vmem:[#allocation2 + $0x20] sm:$0xff] (%p79_p2)  ;;  %v203_v22 = vld [vmem:[#allocation2 + $0x28] sm:$0xff] (%p79_p2) }
  0x47   :  { %v207_v15 = vadd.f32 (%p79_p2), %v206_v12, %v200_v11  ;;  %v225_v16 = vld [vmem:[#allocation3 + $0x8] sm:$0xff] (%p79_p2)  ;;  %v204_v26 = vld [vmem:[#allocation2 + $0x30] sm:$0xff] (%p79_p2) }
  0x48   :  { %v226_v17 = vld [vmem:[#allocation3 + $0x10] sm:$0xff] (%p79_p2)  ;;  %v232_v19 = vadd.f32 (%p79_p2), %v225_v16, %v224_v14  ;;  %v227_v21 = vld [vmem:[#allocation3 + $0x18] sm:$0xff] (%p79_p2) }
  0x49   :  { %v208_v20 = vadd.f32 (%p79_p2), %v207_v15, %v201_v13  ;;  %v228_v25 = vld [vmem:[#allocation3 + $0x20] sm:$0xff] (%p79_p2)  ;;  %v205_v30 = vld [vmem:[#allocation2 + $0x38] sm:$0xff] (%p79_p2) }
  0x4a   :  { %v233_v23 = vadd.f32 %v232_v19, %v226_v17  ;;  %v229_v29 = vld [vmem:[#allocation3 + $0x28] sm:$0xff]  ;;  %v230_v33 = vld [vmem:[#allocation3 + $0x30] sm:$0xff] }
  0x4b   :  { %v209_v24 = vadd.f32 %v208_v20, %v202_v18  ;;  %v231_v36 = vld [vmem:[#allocation3 + $0x38] sm:$0xff] }
  0x4c   :  { %v234_v27 = vadd.f32 %v233_v23, %v227_v21 }
  0x4d   :  { %v210_v28 = vadd.f32 %v209_v24, %v203_v22 }
  0x4e   :  { %v235_v31 = vadd.f32 %v234_v27, %v228_v25 }
  0x4f   :  { %v211_v32 = vadd.f32 %v210_v28, %v204_v26 }
  0x50   :  { %v236_v34 = vadd.f32 %v235_v31, %v229_v29 }
  0x51   :  { %v212_v35 = vadd.f32 %v211_v32, %v205_v30 }
  0x52   :  { %v237_v37 = vadd.f32 %v236_v34, %v230_v33 }
  0x53   :  { %213 = vadd.xlane.f32.xlu0 %v212_v35 }
  0x54   :  { %v238_v38 = vadd.f32 %v237_v37, %v231_v36 }
  0x57   :  { %239 = vadd.xlane.f32.xlu0 %v238_v38 }
  0xe0   :  { %v214_v39 = vpop.xlane.xlu0 %213 }
  0xe1   :  { %v215_v40 = vrot.slane %v214_v39, 4 }
  0xe3   :  { %v216_v41 = vadd.f32 %v215_v40, %v214_v39 }
  0xe4   :  { %v240_v42 = vpop.xlane.xlu0 %239 }
  0xe5   :  { %v217_v43 = vrot.slane %v216_v41, 2  ;;  %v241_v44 = vrot.slane %v240_v42, 4 }
  0xe7   :  { %v242_v45 = vadd.f32 %v241_v44, %v240_v42  ;;  %v218_v46 = vadd.f32 %v217_v43, %v216_v41 }
  0xe9   :  { %v243_v47 = vrot.slane %v242_v45, 2  ;;  %v219_v48 = vrot.slane %v218_v46, 1 }
  0xeb   :  { %v244_v49 = vadd.f32 %v243_v47, %v242_v45  ;;  %v220_v50 = vadd.f32 %v219_v48, %v218_v46 }
  0xed   :  { %295 = vpush %v220_v50  ;;  %v245_v51 = vrot.slane %v244_v49, 1 }
  0xef   :  { %v246_v52 = vadd.f32 %v245_v51, %v244_v49 }
  0xf1   :  { %297 = vpush %v246_v52 }
 0x11e   :  { %s296_s17 = spop %295 }
 0x11f   :  { %v222_v53 = vstv %s296_s17 }
 0x120   :  { %223 = vst [vmem:[#allocation9] sm:$0xff] %v222_v53 }
 0x121   :  { %369 = shalt.err (!%p366_p7)
}
 0x122   :  { %s370_s23 = scalar_lea.hbm %s524_s2, 128 }
 0x123   :  { %p371_p8 = scmp.ne.s32.totalorder %s524_s2, %s370_s23  ;;  %p374_p9 = scmp.lt.u32.totalorder %s370_s23, %s524_s2 }
 0x125   :  { %p376_p10 = pnand %p374_p9, %p371_p8 }
 0x127   :  { %379 = shalt.err (!%p376_p10)
}
 0x128   :  { %259 = dma.vmem_to_hbm [thread:$0]  %s257_s16, 128, %s524_s2, [#allocation6]  }
 0x129   :  { %s298_s30 = spop %297  ;;  %s380_s4 = scalar_lea.vmem %s267_s19, 128 }
 0x12a   :  { %v248_v54 = vstv %s298_s30  ;;  %p381_p11 = scmp.ne.s32.totalorder %s267_s19, %s380_s4  ;;  %p385_p12 = scmp.lt.s32.totalorder %s267_s19, %s267_s19 }
 0x12b   :  { %249 = vst [vmem:[#allocation10] sm:$0xff] %v248_v54  ;;  %p386_p13 = scmp.lt.s32.totalorder %s380_s4, %s380_s4 }
 0x12d   :  { %p387_p0 = por %p386_p13, %p385_p12 }
 0x12f   :  { %p388_p1 = pnand %p387_p0, %p381_p11 }
 0x131   :  { %391 = shalt.err (!%p388_p1)
}
 0x132   :  { %s392_s7 = scalar_lea.hbm %s525_s3, 128 }
 0x133   :  { %p393_p2 = scmp.ne.s32.totalorder %s525_s3, %s392_s7  ;;  %p396_p3 = scmp.lt.u32.totalorder %s392_s7, %s525_s3 }
 0x135   :  { %p398_p4 = pnand %p396_p3, %p393_p2 }
 0x137   :  { %401 = shalt.err (!%p398_p4)
}
 0x138   :  { %269 = dma.vmem_to_hbm [thread:$0]  %s267_s19, 128, %s525_s3, [#allocation11]  }
 0x139   :  { %410 = dma.done.wait [#allocation6], 128  }
 0x13a   :  { %411 = vsyncadd [#allocation6], 4294967168 }
 0x13b   :  { %412 = dma.done.wait [#allocation11], 128  }
 0x13c   :  { %413 = vsyncadd [#allocation11], 4294967168 }
 0x13d   :  { %276 = vsyncpa [#allocation5], 1 }
 0x13e   :  { %277 = vsyncpa [#allocation8], 1 }
 0x13f   :  { %278 = vsyncpa [#allocation6], 1 }
 0x140   :  { %279 = vsyncpa [#allocation11], 1 }

</bundles_post_ra>
